<compile_context>
chip_gen: v5e
topology: v5e:2x2
jax: 0.10.0
libtpu: 0.0.40
codegen_flags: <defaults>
</compile_context>

<pallas_src>
import functools

import jax
import jax.numpy as jnp
from jax.experimental import pallas as pl
from jax.experimental.pallas import tpu as pltpu


def _cmul(xr, xi, yr, yi):
    # standard complex multiply (ComplexMult with norm_flag=False)
    return xr * yr - xi * yi, xr * yi + xi * yr


def _cmul_conj(xr, xi, yr, yi):
    # x * conj(y) with the sign folded in (no materialized negations)
    return xr * yr + xi * yi, xi * yr - xr * yi


def qubit_mult_kernel(psi_mode, h_a_re, h_a_im, h_b_re, h_b_im,
                      r_a_re, r_a_im, r_b_re, r_b_im, psi_ref,
                      a_re_o, a_im_o, b_re_o, b_im_o):
    f32 = jnp.float32
    # All arithmetic in f32: the op is HBM-bound, so the VALU has huge slack;
    # this keeps bf16 inputs accurate vs an f32 reference (free under the bound).
    har, hai = h_a_re[...].astype(f32), h_a_im[...].astype(f32)
    hbr, hbi = h_b_re[...].astype(f32), h_b_im[...].astype(f32)
    rar, rai = r_a_re[...].astype(f32), r_a_im[...].astype(f32)
    rbr, rbi = r_b_re[...].astype(f32), r_b_im[...].astype(f32)

    if psi_mode == "scalar":
        # (1, 2) SMEM holding (cos psi, sin psi), precomputed in the wrapper:
        # no per-step DMA stream and no EUP work for a true scalar angle.
        zr = psi_ref[0, 0]
        zi = psi_ref[0, 1]
    else:
        # (block_b, 1) / (1, D) / (block_b, D): cos/sin stay on the EUP slot
        # (free under the HBM bound) and broadcast against the f32 tiles.
        psi = psi_ref[...].astype(f32)
        zr = jnp.cos(psi)
        zi = jnp.sin(psi)

    # a = h_a*r_a - z*(h_b*conj(r_b))
    t1r, t1i = _cmul(har, hai, rar, rai)        # h_a * r_a
    t2r, t2i = _cmul_conj(hbr, hbi, rbr, rbi)   # h_b * conj(r_b)
    t3r, t3i = _cmul(zr, zi, t2r, t2i)          # z * (h_b * conj(r_b))
    a_re_o[...] = (t1r - t3r).astype(a_re_o.dtype)
    a_im_o[...] = (t1i - t3i).astype(a_im_o.dtype)

    # b = h_a*r_b + z*(h_b*conj(r_a))
    u1r, u1i = _cmul(har, hai, rbr, rbi)        # h_a * r_b
    u2r, u2i = _cmul_conj(hbr, hbi, rar, rai)   # h_b * conj(r_a)
    u3r, u3i = _cmul(zr, zi, u2r, u2i)          # z * (h_b * conj(r_a))
    b_re_o[...] = (u1r + u3r).astype(b_re_o.dtype)
    b_im_o[...] = (u1i + u3i).astype(b_im_o.dtype)


def _sublane_align(dtype):
    """Rows per native sublane tile: 8 for 4-byte, 16 for 2-byte, 32 for 1-byte."""
    return max(8, 32 // jnp.dtype(dtype).itemsize)


def _vmem_capacity_bytes():
    try:
        return int(pltpu.get_tpu_info().vmem_capacity_bytes)
    except Exception:
        return 64 << 20  # conservative default (v7x per-TC VMEM)


def _num_tensorcores():
    """TensorCores that share this chip's HBM (megacore / v7x => 2)."""
    try:
        kind = jax.devices()[0].device_kind.lower()
    except Exception:
        return 1
    if any(s in kind for s in ("v4", "v5p", "v7", "7x")):
        return 2
    return 1


def _pick_block_b(B, D, itemsize, align, target_tile_bytes, num_tc):
    """Rows per block: sublane-aligned, near the HBM-roofline tile size, with
    enough grid steps to keep every TensorCore streaming."""
    if B <= align:
        return B  # single full block (full-dim block is always legal)
    rows_budget = (target_tile_bytes // max(D * itemsize, 1)) // align * align
    rows_budget = max(align, rows_budget)
    if num_tc <= 1:
        # Single TC (v5e/v6e): splitting only adds ~0.35 us/step of overhead.
        return B if B <= rows_budget else rows_budget
    # Multi-TC chip: keep >= 2 steps per core so the parallel axis shards
    # across cores AND each core still has double-buffered overlap.
    min_steps = 2 * num_tc
    cap_rows = max(align, (B // min_steps) // align * align)
    block_b = min(rows_budget, cap_rows)
    # Prefer an even step count so both cores get equal work.
    if (-(-B // block_b)) % 2 and block_b > align:
        for bb in range(block_b - align, align - 1, -align):
            if (-(-B // bb)) % 2 == 0:
                block_b = bb
                break
    return block_b


def qubit_mult(h, r, psi, *, block_b=None):
    """h = (h_a, h_b), r = (r_a, r_b); each component is (re, im) of shape (B, D).

    psi may be a scalar, (B, 1) (per-row), (D,) / (1, D) (per-dimension, the
    natural PyTorch broadcast of a 1-D psi), or (B, D) (per-element)."""
    (h_a, h_b), (r_a, r_b) = h, r
    h_a_re, h_a_im = h_a
    h_b_re, h_b_im = h_b
    r_a_re, r_a_im = r_a
    r_b_re, r_b_im = r_b

    B, D = h_a_re.shape
    dtype = h_a_re.dtype
    itemsize = jnp.dtype(dtype).itemsize

    psi = jnp.asarray(psi)

    # ---- psi shape dispatch -> streaming mode -------------------------------
    if psi.size == 1:
        mode = "scalar"
    elif psi.ndim == 1:
        # A 1-D psi broadcasts over rows against (B, D) in the PyTorch module,
        # i.e. it is a per-dimension angle of length D (per-row must be (B, 1)).
        if psi.shape[0] != D:
            raise ValueError(f"1-D psi must have length D={D}, got {psi.shape}")
        mode = "col"
    elif psi.shape == (B, 1):
        mode = "row"
    elif psi.shape == (1, D):
        mode = "col"
    elif psi.shape == (B, D):
        mode = "full"
    else:
        # Rare fallback: materialize the broadcast (costs an extra HBM stream).
        psi = jnp.broadcast_to(psi, (B, D))
        mode = "full"

    # ---- hardware-aware block / grid / VMEM policy ---------------------------
    vmem_cap = _vmem_capacity_bytes()
    num_tc = _num_tensorcores()
    target_tile_bytes = (2 << 20) if vmem_cap >= (96 << 20) else (1 << 20)

    align = _sublane_align(dtype)
    if mode == "full":
        align = max(align, _sublane_align(psi.dtype))

    if block_b is None:
        block_b = _pick_block_b(B, D, itemsize, align, target_tile_bytes, num_tc)
    block_b = int(min(block_b, B))
    grid = (pl.cdiv(B, block_b),)   # last block may be partial: fine, elementwise

    spec = pl.BlockSpec((block_b, D), lambda i: (i, 0))

    if mode == "scalar":
        p = psi.reshape(()).astype(jnp.float32)
        psi_arr = jnp.stack([jnp.cos(p), jnp.sin(p)]).reshape(1, 2)
        psi_spec = pl.BlockSpec(memory_space=pltpu.MemorySpace.SMEM)
        psi_block_bytes = 0
    elif mode == "row":
        psi_arr = psi.reshape(B, 1).astype(jnp.float32)
        psi_spec = pl.BlockSpec((block_b, 1), lambda i: (i, 0))
        psi_block_bytes = block_b * 4
    elif mode == "col":
        psi_arr = psi.reshape(1, D)
        psi_spec = pl.BlockSpec((1, D), lambda i: (0, 0))
        psi_block_bytes = D * jnp.dtype(psi_arr.dtype).itemsize
    else:  # "full"
        psi_arr = psi
        psi_spec = pl.BlockSpec((block_b, D), lambda i: (i, 0))
        psi_block_bytes = block_b * D * jnp.dtype(psi_arr.dtype).itemsize

    # VMEM: 12 double-buffered streams (+psi), plus margin for the fused f32
    # elementwise temporaries and Mosaic internal scratch.
    tile_bytes = block_b * D * itemsize
    vmem_needed = (2 * (12 * tile_bytes + psi_block_bytes)
                   + 10 * block_b * D * 4 + (4 << 20))
    vmem_limit = max(vmem_needed, 32 << 20)
    vmem_limit = min(vmem_limit, vmem_cap - (12 << 20))   # leave headroom on v7x
    vmem_limit = max(vmem_limit, 16 << 20)

    out_sds = jax.ShapeDtypeStruct((B, D), dtype)

    a_re, a_im, b_re, b_im = pl.pallas_call(
        functools.partial(qubit_mult_kernel, mode),
        out_shape=(out_sds, out_sds, out_sds, out_sds),
        grid_spec=pltpu.PrefetchScalarGridSpec(
            num_scalar_prefetch=0,
            grid=grid,
            in_specs=[spec] * 8 + [psi_spec],
            out_specs=[spec] * 4,
        ),
        compiler_params=pltpu.CompilerParams(
            dimension_semantics=("parallel",),
            vmem_limit_bytes=int(vmem_limit),
        ),
    )(h_a_re, h_a_im, h_b_re, h_b_im,
      r_a_re, r_a_im, r_b_re, r_b_im, psi_arr)

    return (a_re, a_im), (b_re, b_im)


def qubit_mult_ref(h, r, psi):
    """Pure-JAX reference mirroring the PyTorch forward (norm_flag=False)."""
    (h_a, h_b), (r_a, r_b) = h, r

    def cmul(x, y):
        return (x[0] * y[0] - x[1] * y[1], x[0] * y[1] + x[1] * y[0])

    def cadd(x, y):
        return (x[0] + y[0], x[1] + y[1])

    def csub(x, y):
        return (x[0] - y[0], x[1] - y[1])

    def cconj(x):
        return (x[0], -x[1])

    z = (jnp.cos(psi), jnp.sin(psi))
    a = csub(cmul(h_a, r_a), cmul(z, cmul(h_b, cconj(r_b))))
    b = cadd(cmul(h_a, r_b), cmul(z, cmul(h_b, cconj(r_a))))
    return a, b


def _make_inputs(key, B, D, dtype):
    keys = jax.random.split(key, 8)

    def mk(k):
        return jax.random.normal(k, (B, D), dtype=jnp.float32).astype(dtype)

    h = ((mk(keys[0]), mk(keys[1])), (mk(keys[2]), mk(keys[3])))
    r = ((mk(keys[4]), mk(keys[5])), (mk(keys[6]), mk(keys[7])))
    return h, r


def _run_case(key, B, D, dtype, psi, block_b=None, rtol=1e-5, atol=1e-5):
    h, r = _make_inputs(key, B, D, dtype)
    out = qubit_mult(h, r, psi, block_b=block_b)
    jax.block_until_ready(out)

    def to_f32(t):
        return jax.tree.map(lambda x: x.astype(jnp.float32), t)

    ref = qubit_mult_ref(to_f32(h), to_f32(r), jnp.asarray(psi).astype(jnp.float32))
    ok = True
    for got, want in zip(jax.tree.leaves(out), jax.tree.leaves(ref)):
        ok &= bool(jnp.allclose(got.astype(jnp.float32), want, rtol=rtol, atol=atol))
    return ok


if __name__ == "__main__":
    key = jax.random.PRNGKey(0)
    k = jax.random.split(key, 8)
    B, D = 16, 256
    ok = True

    # 1) scalar psi (SMEM cos/sin scalars, no psi HBM stream)
    ok &= _run_case(k[0], B, D, jnp.float32, 0.37)

    # 2) per-row psi (B, 1): narrow stream, lane-broadcast in-kernel
    psi_row = jax.random.normal(k[1], (B, 1), dtype=jnp.float32)
    ok &= _run_case(k[2], B, D, jnp.float32, psi_row)

    # 3) per-dimension psi (D,): single (1, D) block, row-broadcast in-kernel
    psi_col = jax.random.normal(k[3], (D,), dtype=jnp.float32)
    ok &= _run_case(k[4], B, D, jnp.float32, psi_col)

    # 4) per-element psi (B, D): full stream
    psi_full = jax.random.normal(k[5], (B, D), dtype=jnp.float32)
    ok &= _run_case(k[6], B, D, jnp.float32, psi_full)

    # 5) B not a multiple of block_b: exercises the cdiv grid / padded last block
    B2 = 40
    psi_full2 = jax.random.normal(k[7], (B2, D), dtype=jnp.float32)
    ok &= _run_case(k[0], B2, D, jnp.float32, psi_full2, block_b=16)

    # 6) bf16 inputs, f32 intermediates in-kernel (output rounded to bf16)
    ok &= _run_case(k[1], B, D, jnp.bfloat16, psi_full, rtol=2e-2, atol=2e-2)

    assert ok, "mismatch vs reference"
    print("KERNEL_OK")
</pallas_src>

<mosaic_0001>
module attributes {stable_mosaic.version = 11 : i64} {
  func.func @qubit_mult_kernel(%arg0: i32, %arg1: memref<16x256xf32, #tpu.memory_space<vmem>>, %arg2: memref<16x256xf32, #tpu.memory_space<vmem>>, %arg3: memref<16x256xf32, #tpu.memory_space<vmem>>, %arg4: memref<16x256xf32, #tpu.memory_space<vmem>>, %arg5: memref<16x256xf32, #tpu.memory_space<vmem>>, %arg6: memref<16x256xf32, #tpu.memory_space<vmem>>, %arg7: memref<16x256xf32, #tpu.memory_space<vmem>>, %arg8: memref<16x256xf32, #tpu.memory_space<vmem>>, %arg9: memref<1x2xf32, #tpu.memory_space<smem>>, %arg10: memref<16x256xf32, #tpu.memory_space<vmem>>, %arg11: memref<16x256xf32, #tpu.memory_space<vmem>>, %arg12: memref<16x256xf32, #tpu.memory_space<vmem>>, %arg13: memref<16x256xf32, #tpu.memory_space<vmem>>) attributes {dimension_semantics = [#tpu.dimension_semantics<parallel>], iteration_bounds = array<i64: 1>, scalar_prefetch = 0 : i64, scratch_operands = 0 : i64, tpu.core_type = #tpu.core_type<tc>, window_params = [{transform_indices = @transform_0, window_bounds = array<i64: 16, 256>}, {transform_indices = @transform_1, window_bounds = array<i64: 16, 256>}, {transform_indices = @transform_2, window_bounds = array<i64: 16, 256>}, {transform_indices = @transform_3, window_bounds = array<i64: 16, 256>}, {transform_indices = @transform_4, window_bounds = array<i64: 16, 256>}, {transform_indices = @transform_5, window_bounds = array<i64: 16, 256>}, {transform_indices = @transform_6, window_bounds = array<i64: 16, 256>}, {transform_indices = @transform_7, window_bounds = array<i64: 16, 256>}, {transform_indices = @transform_8, window_bounds = array<i64: 1, 2>}, {transform_indices = @transform_9, window_bounds = array<i64: 16, 256>}, {transform_indices = @transform_10, window_bounds = array<i64: 16, 256>}, {transform_indices = @transform_11, window_bounds = array<i64: 16, 256>}, {transform_indices = @transform_12, window_bounds = array<i64: 16, 256>}]} {
    %c0 = arith.constant 0 : index
    %c0_0 = arith.constant 0 : index
    %0 = vector.load %arg1[%c0, %c0_0] : memref<16x256xf32, #tpu.memory_space<vmem>>, vector<16x256xf32>
    %c0_1 = arith.constant 0 : index
    %c0_2 = arith.constant 0 : index
    %1 = vector.load %arg2[%c0_1, %c0_2] : memref<16x256xf32, #tpu.memory_space<vmem>>, vector<16x256xf32>
    %c0_3 = arith.constant 0 : index
    %c0_4 = arith.constant 0 : index
    %2 = vector.load %arg3[%c0_3, %c0_4] : memref<16x256xf32, #tpu.memory_space<vmem>>, vector<16x256xf32>
    %c0_5 = arith.constant 0 : index
    %c0_6 = arith.constant 0 : index
    %3 = vector.load %arg4[%c0_5, %c0_6] : memref<16x256xf32, #tpu.memory_space<vmem>>, vector<16x256xf32>
    %c0_7 = arith.constant 0 : index
    %c0_8 = arith.constant 0 : index
    %4 = vector.load %arg5[%c0_7, %c0_8] : memref<16x256xf32, #tpu.memory_space<vmem>>, vector<16x256xf32>
    %c0_9 = arith.constant 0 : index
    %c0_10 = arith.constant 0 : index
    %5 = vector.load %arg6[%c0_9, %c0_10] : memref<16x256xf32, #tpu.memory_space<vmem>>, vector<16x256xf32>
    %c0_11 = arith.constant 0 : index
    %c0_12 = arith.constant 0 : index
    %6 = vector.load %arg7[%c0_11, %c0_12] : memref<16x256xf32, #tpu.memory_space<vmem>>, vector<16x256xf32>
    %c0_13 = arith.constant 0 : index
    %c0_14 = arith.constant 0 : index
    %7 = vector.load %arg8[%c0_13, %c0_14] : memref<16x256xf32, #tpu.memory_space<vmem>>, vector<16x256xf32>
    %c0_15 = arith.constant 0 : index
    %c0_16 = arith.constant 0 : index
    %8 = memref.load %arg9[%c0_15, %c0_16] : memref<1x2xf32, #tpu.memory_space<smem>>
    %c0_17 = arith.constant 0 : index
    %c1 = arith.constant 1 : index
    %9 = memref.load %arg9[%c0_17, %c1] : memref<1x2xf32, #tpu.memory_space<smem>>
    %10 = arith.mulf %0, %4 : vector<16x256xf32>
    %11 = arith.mulf %1, %5 : vector<16x256xf32>
    %12 = arith.subf %10, %11 : vector<16x256xf32>
    %13 = arith.mulf %0, %5 : vector<16x256xf32>
    %14 = arith.mulf %1, %4 : vector<16x256xf32>
    %15 = arith.addf %13, %14 : vector<16x256xf32>
    %16 = arith.mulf %2, %6 : vector<16x256xf32>
    %17 = arith.mulf %3, %7 : vector<16x256xf32>
    %18 = arith.addf %16, %17 : vector<16x256xf32>
    %19 = arith.mulf %3, %6 : vector<16x256xf32>
    %20 = arith.mulf %2, %7 : vector<16x256xf32>
    %21 = arith.subf %19, %20 : vector<16x256xf32>
    %22 = vector.broadcast %8 : f32 to vector<16x256xf32>
    %23 = arith.mulf %22, %18 : vector<16x256xf32>
    %24 = vector.broadcast %9 : f32 to vector<16x256xf32>
    %25 = arith.mulf %24, %21 : vector<16x256xf32>
    %26 = arith.subf %23, %25 : vector<16x256xf32>
    %27 = vector.broadcast %8 : f32 to vector<16x256xf32>
    %28 = arith.mulf %27, %21 : vector<16x256xf32>
    %29 = vector.broadcast %9 : f32 to vector<16x256xf32>
    %30 = arith.mulf %29, %18 : vector<16x256xf32>
    %31 = arith.addf %28, %30 : vector<16x256xf32>
    %32 = arith.subf %12, %26 : vector<16x256xf32>
    %c0_18 = arith.constant 0 : index
    %c0_19 = arith.constant 0 : index
    %33 = vector.load %arg10[%c0_18, %c0_19] : memref<16x256xf32, #tpu.memory_space<vmem>>, vector<16x256xf32>
    tpu.vector_store %arg10[%c0_18, %c0_19], %32 {strides = array<i32>} : memref<16x256xf32, #tpu.memory_space<vmem>>, vector<16x256xf32>,
    %34 = arith.subf %15, %31 : vector<16x256xf32>
    %c0_20 = arith.constant 0 : index
    %c0_21 = arith.constant 0 : index
    %35 = vector.load %arg11[%c0_20, %c0_21] : memref<16x256xf32, #tpu.memory_space<vmem>>, vector<16x256xf32>
    tpu.vector_store %arg11[%c0_20, %c0_21], %34 {strides = array<i32>} : memref<16x256xf32, #tpu.memory_space<vmem>>, vector<16x256xf32>,
    %36 = arith.mulf %0, %6 : vector<16x256xf32>
    %37 = arith.mulf %1, %7 : vector<16x256xf32>
    %38 = arith.subf %36, %37 : vector<16x256xf32>
    %39 = arith.mulf %0, %7 : vector<16x256xf32>
    %40 = arith.mulf %1, %6 : vector<16x256xf32>
    %41 = arith.addf %39, %40 : vector<16x256xf32>
    %42 = arith.mulf %2, %4 : vector<16x256xf32>
    %43 = arith.mulf %3, %5 : vector<16x256xf32>
    %44 = arith.addf %42, %43 : vector<16x256xf32>
    %45 = arith.mulf %3, %4 : vector<16x256xf32>
    %46 = arith.mulf %2, %5 : vector<16x256xf32>
    %47 = arith.subf %45, %46 : vector<16x256xf32>
    %48 = vector.broadcast %8 : f32 to vector<16x256xf32>
    %49 = arith.mulf %48, %44 : vector<16x256xf32>
    %50 = vector.broadcast %9 : f32 to vector<16x256xf32>
    %51 = arith.mulf %50, %47 : vector<16x256xf32>
    %52 = arith.subf %49, %51 : vector<16x256xf32>
    %53 = vector.broadcast %8 : f32 to vector<16x256xf32>
    %54 = arith.mulf %53, %47 : vector<16x256xf32>
    %55 = vector.broadcast %9 : f32 to vector<16x256xf32>
    %56 = arith.mulf %55, %44 : vector<16x256xf32>
    %57 = arith.addf %54, %56 : vector<16x256xf32>
    %58 = arith.addf %38, %52 : vector<16x256xf32>
    %c0_22 = arith.constant 0 : index
    %c0_23 = arith.constant 0 : index
    %59 = vector.load %arg12[%c0_22, %c0_23] : memref<16x256xf32, #tpu.memory_space<vmem>>, vector<16x256xf32>
    tpu.vector_store %arg12[%c0_22, %c0_23], %58 {strides = array<i32>} : memref<16x256xf32, #tpu.memory_space<vmem>>, vector<16x256xf32>,
    %60 = arith.addf %41, %57 : vector<16x256xf32>
    %c0_24 = arith.constant 0 : index
    %c0_25 = arith.constant 0 : index
    %61 = vector.load %arg13[%c0_24, %c0_25] : memref<16x256xf32, #tpu.memory_space<vmem>>, vector<16x256xf32>
    tpu.vector_store %arg13[%c0_24, %c0_25], %60 {strides = array<i32>} : memref<16x256xf32, #tpu.memory_space<vmem>>, vector<16x256xf32>,
    return
  }
  func.func @transform_0(%arg0: i32) -> (i32, i32) {
    %c0_i32 = arith.constant 0 : i32
    %c0_i32_0 = arith.constant 0 : i32
    return %arg0, %c0_i32 : i32, i32
  }
  func.func @transform_1(%arg0: i32) -> (i32, i32) {
    %c0_i32 = arith.constant 0 : i32
    %c0_i32_0 = arith.constant 0 : i32
    return %arg0, %c0_i32 : i32, i32
  }
  func.func @transform_2(%arg0: i32) -> (i32, i32) {
    %c0_i32 = arith.constant 0 : i32
    %c0_i32_0 = arith.constant 0 : i32
    return %arg0, %c0_i32 : i32, i32
  }
  func.func @transform_3(%arg0: i32) -> (i32, i32) {
    %c0_i32 = arith.constant 0 : i32
    %c0_i32_0 = arith.constant 0 : i32
    return %arg0, %c0_i32 : i32, i32
  }
  func.func @transform_4(%arg0: i32) -> (i32, i32) {
    %c0_i32 = arith.constant 0 : i32
    %c0_i32_0 = arith.constant 0 : i32
    return %arg0, %c0_i32 : i32, i32
  }
  func.func @transform_5(%arg0: i32) -> (i32, i32) {
    %c0_i32 = arith.constant 0 : i32
    %c0_i32_0 = arith.constant 0 : i32
    return %arg0, %c0_i32 : i32, i32
  }
  func.func @transform_6(%arg0: i32) -> (i32, i32) {
    %c0_i32 = arith.constant 0 : i32
    %c0_i32_0 = arith.constant 0 : i32
    return %arg0, %c0_i32 : i32, i32
  }
  func.func @transform_7(%arg0: i32) -> (i32, i32) {
    %c0_i32 = arith.constant 0 : i32
    %c0_i32_0 = arith.constant 0 : i32
    return %arg0, %c0_i32 : i32, i32
  }
  func.func @transform_8(%arg0: i32) -> (i32, i32) {
    %c0_i32 = arith.constant 0 : i32
    %c0_i32_0 = arith.constant 0 : i32
    %c0_i32_1 = arith.constant 0 : i32
    return %c0_i32, %c0_i32_0 : i32, i32
  }
  func.func @transform_9(%arg0: i32) -> (i32, i32) {
    %c0_i32 = arith.constant 0 : i32
    %c0_i32_0 = arith.constant 0 : i32
    return %arg0, %c0_i32 : i32, i32
  }
  func.func @transform_10(%arg0: i32) -> (i32, i32) {
    %c0_i32 = arith.constant 0 : i32
    %c0_i32_0 = arith.constant 0 : i32
    return %arg0, %c0_i32 : i32, i32
  }
  func.func @transform_11(%arg0: i32) -> (i32, i32) {
    %c0_i32 = arith.constant 0 : i32
    %c0_i32_0 = arith.constant 0 : i32
    return %arg0, %c0_i32 : i32, i32
  }
  func.func @transform_12(%arg0: i32) -> (i32, i32) {
    %c0_i32 = arith.constant 0 : i32
    %c0_i32_0 = arith.constant 0 : i32
    return %arg0, %c0_i32 : i32, i32
  }
}

</mosaic_0001>

<bundles_post_ra>
// kernel: tpu_custom_call.1
= control target key start
LH: loop header
LB: loop body
LE: loop exit
PB: predicated region body
PF: predicated region fallthrough
CT: control target
= control target key end

     0   :  { %18 = vsyncpa [#allocation3], 0  ;;  %s1213_s0 = inlined_call_operand.hbm [shape: f32[16,256], index: 0, kind: input, shape index: {}]   ;;  %s1214_s1 = inlined_call_operand.hbm [shape: f32[16,256], index: 1, kind: input, shape index: {}]   ;;  %s1215_s2 = inlined_call_operand.hbm [shape: f32[16,256], index: 2, kind: input, shape index: {}]   ;;  %s1216_s3 = inlined_call_operand.hbm [shape: f32[16,256], index: 3, kind: input, shape index: {}]   ;;  %s1217_s4 = inlined_call_operand.hbm [shape: f32[16,256], index: 4, kind: input, shape index: {}]   ;;  %s1218_s5 = inlined_call_operand.hbm [shape: f32[16,256], index: 5, kind: input, shape index: {}]   ;;  %s1219_s6 = inlined_call_operand.hbm [shape: f32[16,256], index: 6, kind: input, shape index: {}]   ;;  %s1220_s7 = inlined_call_operand.hbm [shape: f32[16,256], index: 7, kind: input, shape index: {}]   ;;  %s1221_s8 = inlined_call_operand.vmem [shape: f32[1,2], index: 8, kind: input, shape index: {}]   ;;  %s1222_s9 = inlined_call_operand.hbm [shape: f32[16,256], index: 9, kind: output, shape index: {0}]   ;;  %s1223_s10 = inlined_call_operand.hbm [shape: f32[16,256], index: 10, kind: output, shape index: {1}]   ;;  %s1224_s11 = inlined_call_operand.hbm [shape: f32[16,256], index: 11, kind: output, shape index: {2}]   ;;  %s1225_s12 = inlined_call_operand.hbm [shape: f32[16,256], index: 12, kind: output, shape index: {3}]  }
   0x1   :  { %19 = vsyncpa [#allocation7], 0 }
   0x2   :  { %20 = vsyncpa [#allocation10], 0 }
   0x3   :  { %21 = vsyncpa [#allocation13], 0 }
   0x4   :  { %22 = vsyncpa [#allocation16], 0 }
   0x5   :  { %23 = vsyncpa [#allocation5], 0 }
   0x6   :  { %24 = vsyncpa [#allocation4], 0 }
   0x7   :  { %25 = vsyncpa [#allocation20], 0 }
   0x8   :  { %26 = vsyncpa [#allocation23], 0  ;;  %s44_s23 = sshll.u32 %s1214_s1, 4  ;;  %s800_s24 = smov [#allocation6]   ;;  %s45_s23 = int_to_ptr.hbm [resolvable:$true] %s44_s23 }
   0x9   :  { %s46_s25 = sshll.u32 %s800_s24, 4  ;;  %s70_s28 = sshll.u32 %s1216_s3, 4  ;;  %s47_s25 = int_to_ptr.vmem [resolvable:$true] %s46_s25  ;;  %s71_s28 = int_to_ptr.hbm [resolvable:$true] %s70_s28 }
   0xa   :  { %s801_s29 = smov 256   ;;  %s802_s30 = smov 16  }
   0xb   :  { %52 = dma.hbm_to_vmem [thread:$0]  %s45_s23, 512, %s47_s25, [#allocation7], %s801_s29, %s801_s29, %s802_s30  }
   0xc   :  { %s803_s13 = smov [#allocation9]   ;;  %s96_s1 = sshll.u32 %s1218_s5, 4  ;;  %s97_s1 = int_to_ptr.hbm [resolvable:$true] %s96_s1 }
   0xd   :  { %s72_s14 = sshll.u32 %s803_s13, 4  ;;  %s31_s18 = sshll.u32 %s1213_s0, 4  ;;  %s73_s14 = int_to_ptr.vmem [resolvable:$true] %s72_s14  ;;  %s32_s18 = int_to_ptr.hbm [resolvable:$true] %s31_s18 }
   0xe   :  { %78 = dma.hbm_to_vmem [thread:$0]  %s71_s28, 512, %s73_s14, [#allocation10], %s801_s29, %s801_s29, %s802_s30  }
   0xf   :  { %s804_s19 = smov [#allocation12]   ;;  %s805_s21 = smov [#allocation2]  }
  0x10   :  { %s98_s20 = sshll.u32 %s804_s19, 4  ;;  %s33_s5 = sshll.u32 %s805_s21, 4  ;;  %s99_s20 = int_to_ptr.vmem [resolvable:$true] %s98_s20  ;;  %s34_s5 = int_to_ptr.vmem [resolvable:$true] %s33_s5 }
  0x11   :  { %104 = dma.hbm_to_vmem [thread:$0]  %s97_s1, 512, %s99_s20, [#allocation13], %s801_s29, %s801_s29, %s802_s30  }
  0x12   :  { %s57_s24 = sshll.u32 %s1215_s2, 4  ;;  %s83_s26 = sshll.u32 %s1217_s4, 4  ;;  %s58_s24 = int_to_ptr.hbm [resolvable:$true] %s57_s24  ;;  %s84_s26 = int_to_ptr.hbm [resolvable:$true] %s83_s26 }
  0x13   :  { %39 = dma.hbm_to_vmem [thread:$0]  %s32_s18, 512, %s34_s5, [#allocation3], %s801_s29, %s801_s29, %s802_s30  }
  0x14   :  { %s806_s27 = smov [#allocation8]   ;;  %s807_s13 = smov [#allocation11]  }
  0x15   :  { %s59_s28 = sshll.u32 %s806_s27, 4  ;;  %s85_s2 = sshll.u32 %s807_s13, 4  ;;  %s60_s28 = int_to_ptr.vmem [resolvable:$true] %s59_s28  ;;  %s86_s2 = int_to_ptr.vmem [resolvable:$true] %s85_s2 }
  0x16   :  { %65 = dma.hbm_to_vmem [thread:$0]  %s58_s24, 512, %s60_s28, [#allocation7], %s801_s29, %s801_s29, %s802_s30  }
  0x17   :  { %s109_s16 = sshll.u32 %s1219_s6, 4  ;;  %s122_s3 = sshll.u32 %s1220_s7, 4  ;;  %s110_s16 = int_to_ptr.hbm [resolvable:$true] %s109_s16  ;;  %s123_s3 = int_to_ptr.hbm [resolvable:$true] %s122_s3 }
  0x18   :  { %91 = dma.hbm_to_vmem [thread:$0]  %s84_s26, 512, %s86_s2, [#allocation10], %s801_s29, %s801_s29, %s802_s30  }
  0x19   :  { %s808_s17 = smov [#allocation14]   ;;  %s809_s19 = smov [#allocation15]  }
  0x1a   :  { %s111_s18 = sshll.u32 %s808_s17, 4  ;;  %s124_s6 = sshll.u32 %s809_s19, 4  ;;  %s112_s18 = int_to_ptr.vmem [resolvable:$true] %s111_s18  ;;  %s125_s6 = int_to_ptr.vmem [resolvable:$true] %s124_s6 }
  0x1b   :  { %117 = dma.hbm_to_vmem [thread:$0]  %s110_s16, 512, %s112_s18, [#allocation13], %s801_s29, %s801_s29, %s802_s30  }
  0x1c   :  { %s136_s5 = sshll.u32 %s1221_s8, 4  ;;  %s810_s7 = smov [#allocation17]   ;;  %s137_s5 = int_to_ptr.vmem [resolvable:$true] %s136_s5 }
  0x1d   :  { %130 = dma.hbm_to_vmem [thread:$0]  %s123_s3, 512, %s125_s6, [#allocation16], %s801_s29, %s801_s29, %s802_s30  }
  0x1e   :  { %139 = dma.vmem_to_smem %s137_s5, 16, %s810_s7, [#allocation5]  }
  0x1f   :  { %782 = dma.done.wait [#allocation3], 512  }
  0x20   :  { %783 = vsyncadd [#allocation3], 4294966784 }
  0x21   :  { %784 = dma.done.wait [#allocation7], 1024  }
  0x22   :  { %785 = vsyncadd [#allocation7], 4294966272 }
  0x23   :  { %786 = dma.done.wait [#allocation10], 1024  }
  0x24   :  { %787 = vsyncadd [#allocation10], 4294966272 }
  0x25   :  { %788 = dma.done.wait [#allocation13], 1024  }
  0x26   :  { %789 = vsyncadd [#allocation13], 4294966272 }
  0x27   :  { %790 = dma.done.wait [#allocation16], 512  }
  0x28   :  { %791 = vsyncadd [#allocation16], 4294966784 }
  0x29   :  { %792 = dma.done.wait [#allocation5], 16  }
  0x2a   :  { %793 = vsyncadd [#allocation5], 4294967280 }
  0x2b   :  { %176 = sfence }
  0x2c   :  { %v931_v0 = vld [vmem:[#allocation2] sm:$0xff]  ;;  %s937_s8 = sld [smem:[#allocation17]]  ;;  %v955_v10 = vld [vmem:[#allocation2 + $0x8] sm:$0xff]  ;;  %v1001_v32 = vld [vmem:[#allocation2 + $0x10] sm:$0xff]  ;;  %s811_s23 = smov [#allocation19]  }
  0x2d   :  { %v933_v1 = vld [vmem:[#allocation6] sm:$0xff]  ;;  %s945_s22 = sld [smem:[#allocation17 + $0x1]]  ;;  %v973_v17 = vld [vmem:[#allocation6 + $0x8] sm:$0xff]  ;;  %v1003_v33 = vld [vmem:[#allocation6 + $0x10] sm:$0xff]  ;;  %s1098_s24 = sshll.u32 %s811_s23, 4  ;;  %s407_s24 = int_to_ptr.vmem [resolvable:$true] %s1098_s24 }
  0x2e   :  { %v935_v2 = vld [vmem:[#allocation8] sm:$0xff]  ;;  %v975_v18 = vld [vmem:[#allocation8 + $0x8] sm:$0xff]  ;;  %v1014_v38 = vld [vmem:[#allocation8 + $0x10] sm:$0xff]  ;;  %s408_s26 = sshll.u32 %s1223_s10, 4  ;;  %s812_s27 = smov [#allocation18]   ;;  %s409_s26 = int_to_ptr.hbm [resolvable:$true] %s408_s26 }
  0x2f   :  { %v939_v3 = vld [vmem:[#allocation9] sm:$0xff]  ;;  %v977_v19 = vld [vmem:[#allocation9 + $0x8] sm:$0xff]  ;;  %v1016_v39 = vld [vmem:[#allocation9 + $0x10] sm:$0xff]  ;;  %s1109_s28 = sshll.u32 %s812_s27, 4  ;;  %s395_s2 = sshll.u32 %s1222_s9, 4  ;;  %s394_s28 = int_to_ptr.vmem [resolvable:$true] %s1109_s28  ;;  %s396_s2 = int_to_ptr.hbm [resolvable:$true] %s395_s2 }
  0x30   :  { %v941_v4 = vld [vmem:[#allocation11] sm:$0xff]  ;;  %v979_v21 = vld [vmem:[#allocation11 + $0x8] sm:$0xff]  ;;  %v1018_v40 = vld [vmem:[#allocation11 + $0x10] sm:$0xff]  ;;  %s813_s9 = smov [#allocation21]   ;;  %s421_s4 = sshll.u32 %s1224_s11, 4  ;;  %s422_s4 = int_to_ptr.hbm [resolvable:$true] %s421_s4 }
  0x31   :  { %v943_v5 = vld [vmem:[#allocation12] sm:$0xff]  ;;  %v227_v9 = vmul.f32 %v941_v4, %v933_v1  ;;  %v959_v11 = vmul.f32 %v941_v4, %v931_v0  ;;  %v981_v22 = vld [vmem:[#allocation12 + $0x8] sm:$0xff]  ;;  %v228_v31 = vmul.f32 %v979_v21, %v973_v17  ;;  %v1026_v45 = vld [vmem:[#allocation12 + $0x10] sm:$0xff]  ;;  %v229_v51 = vmul.f32 %v1018_v40, %v1003_v33  ;;  %s1192_s14 = sshll.u32 %s813_s9, 4  ;;  %s814_s1 = smov [#allocation22]   ;;  %s420_s14 = int_to_ptr.vmem [resolvable:$true] %s1192_s14 }
  0x32   :  { %v947_v6 = vld [vmem:[#allocation14] sm:$0xff]  ;;  %v223_v8 = vmul.f32 %v943_v5, %v931_v0  ;;  %v963_v12 = vmul.f32 %v943_v5, %v933_v1  ;;  %v983_v23 = vld [vmem:[#allocation14 + $0x8] sm:$0xff]  ;;  %v224_v30 = vmul.f32 %v981_v22, %v955_v10  ;;  %v1006_v34 = vstv %s937_s8  ;;  %v1028_v46 = vld [vmem:[#allocation14 + $0x10] sm:$0xff]  ;;  %s432_s3 = sshll.u32 %s814_s1, 4  ;;  %s434_s11 = sshll.u32 %s1225_s12, 4  ;;  %s433_s3 = int_to_ptr.vmem [resolvable:$true] %s432_s3  ;;  %s435_s11 = int_to_ptr.hbm [resolvable:$true] %s434_s11 }
  0x33   :  { %1227 = vst [vmem:[#allocation33_spill] sm:$0xff] %v947_v6  ;;  %v949_v7 = vld [vmem:[#allocation15] sm:$0xff]  ;;  %v235_v13 = vmul.f32 %v947_v6, %v935_v2  ;;  %v247_v15 = vmul.f32 %v947_v6, %v939_v3  ;;  %v989_v25 = vmul.f32 %v947_v6, %v931_v0  ;;  %v995_v29 = vld [vmem:[#allocation15 + $0x8] sm:$0xff]  ;;  %v236_v35 = vmul.f32 %v983_v23, %v975_v18  ;;  %v1030_v47 = vld [vmem:[#allocation15 + $0x10] sm:$0xff] }
  0x34   :  { %v239_v14 = vmul.f32 %v949_v7, %v939_v3  ;;  %v251_v16 = vmul.f32 %v949_v7, %v935_v2  ;;  %v231_v20 = vadd.f32 %v227_v9, %v223_v8  ;;  %v993_v26 = vmul.f32 %v949_v7, %v933_v1  ;;  %v1037_v52 = vld [vmem:[#allocation2 + $0x18] sm:$0xff] }
  0x35   :  { %v240_v36 = vmul.f32 %v995_v29, %v977_v19  ;;  %v248_v37 = vmul.f32 %v983_v23, %v977_v19  ;;  %v1021_v41 = vstv %s945_s22  ;;  %v232_v43 = vadd.f32 %v228_v31, %v224_v30  ;;  %v1039_v53 = vld [vmem:[#allocation6 + $0x18] sm:$0xff] }
  0x36   :  { %v243_v27 = vadd.f32 %v239_v14, %v235_v13  ;;  %v255_v28 = vsub.f32 %v247_v15, %v251_v16  ;;  %v252_v44 = vmul.f32 %v995_v29, %v975_v18  ;;  %v225_v50 = vmul.f32 %v1026_v45, %v1001_v32  ;;  %v1047_v58 = vld [vmem:[#allocation8 + $0x18] sm:$0xff] }
  0x37   :  { %v244_v49 = vadd.f32 %v240_v36, %v236_v35  ;;  %v237_v55 = vmul.f32 %v1028_v46, %v1014_v38  ;;  %v241_v56 = vmul.f32 %v1030_v47, %v1016_v39  ;;  %v249_v57 = vmul.f32 %v1028_v46, %v1016_v39  ;;  %v1049_v59 = vld [vmem:[#allocation9 + $0x18] sm:$0xff] }
  0x38   :  { %v273_v42 = vmul.f32 %v1006_v34, %v255_v28  ;;  %v277_v48 = vmul.f32 %v1021_v41, %v243_v27  ;;  %v256_v54 = vsub.f32 %v248_v37, %v252_v44  ;;  %v1051_v60 = vld [vmem:[#allocation11 + $0x18] sm:$0xff]  ;;  %v233_v63 = vadd.f32 %v229_v51, %v225_v50 }
  0x39   :  { %v278_v62 = vmul.f32 %v1021_v41, %v244_v49  ;;  %v253_v8 = vmul.f32 %v1030_v47, %v1014_v38  ;;  %v1056_v9 = vld [vmem:[#allocation12 + $0x18] sm:$0xff]  ;;  %v245_v16 = vadd.f32 %v241_v56, %v237_v55  ;;  %v230_v31 = vmul.f32 %v1051_v60, %v1039_v53 }
  0x3a   :  { %v281_v61 = vadd.f32 %v277_v48, %v273_v42  ;;  %v1058_v13 = vld [vmem:[#allocation14 + $0x18] sm:$0xff]  ;;  %v274_v15 = vmul.f32 %v1006_v34, %v256_v54  ;;  %v226_v30 = vmul.f32 %v1056_v9, %v1037_v52  ;;  %v217_v6 = vmul.f32 %v1026_v45, %v1003_v33 }
  0x3b   :  { %v1060_v14 = vld [vmem:[#allocation15 + $0x18] sm:$0xff]  ;;  %v257_v36 = vsub.f32 %v249_v57, %v253_v8  ;;  %v238_v37 = vmul.f32 %v1058_v13, %v1047_v58  ;;  %v279_v48 = vmul.f32 %v1021_v41, %v245_v16  ;;  %v250_v51 = vmul.f32 %v1058_v13, %v1049_v59 }
  0x3c   :  { %v293_v35 = vsub.f32 %v231_v20, %v281_v61  ;;  %v242_v42 = vmul.f32 %v1060_v14, %v1049_v59  ;;  %v282_v44 = vadd.f32 %v278_v62, %v274_v15  ;;  %v234_v50 = vadd.f32 %v230_v31, %v226_v30 }
  0x3d   :  { %v275_v55 = vmul.f32 %v1006_v34, %v257_v36  ;;  %v254_v20 = vmul.f32 %v1060_v14, %v1047_v58  ;;  %v260_v57 = vmul.f32 %v1006_v34, %v243_v27  ;;  %v265_v8 = vmul.f32 %v1021_v41, %v255_v28 }
  0x3e   :  { %297 = vst [vmem:[#allocation19] sm:$0xff] %v293_v35  ;;  %v246_v56 = vadd.f32 %v242_v42, %v238_v37  ;;  %v294_v61 = vsub.f32 %v232_v43, %v282_v44  ;;  %v212_v62 = vmul.f32 %v979_v21, %v955_v10  ;;  %v216_v15 = vmul.f32 %v981_v22, %v973_v17 }
  0x3f   :  { %v283_v30 = vadd.f32 %v279_v48, %v275_v55  ;;  %v258_v31 = vsub.f32 %v250_v51, %v254_v20  ;;  %v261_v37 = vmul.f32 %v1006_v34, %v244_v49  ;;  %v269_v42 = vsub.f32 %v260_v57, %v265_v8 }
  0x40   :  { %v280_v35 = vmul.f32 %v1021_v41, %v246_v56  ;;  %298 = vst [vmem:[#allocation19 + $0x8] sm:$0xff] %v294_v61  ;;  %v220_v24 = vsub.f32 %v212_v62, %v216_v15  ;;  %v266_v27 = vmul.f32 %v1021_v41, %v256_v54  ;;  %v213_v28 = vmul.f32 %v1018_v40, %v1001_v32 }
  0x41   :  { %v295_v43 = vsub.f32 %v233_v63, %v283_v30  ;;  %v276_v44 = vmul.f32 %v1006_v34, %v258_v31  ;;  %v262_v48 = vmul.f32 %v1006_v34, %v245_v16  ;;  %v1228_v51 = vsub.f32 %v959_v11, %v963_v12 }
  0x42   :  { %v270_v55 = vsub.f32 %v261_v37, %v266_v27  ;;  %v267_v20 = vmul.f32 %v1021_v41, %v257_v36  ;;  %v214_v54 = vmul.f32 %v1051_v60, %v1037_v52  ;;  %v221_v16 = vsub.f32 %v213_v28, %v217_v6 }
  0x43   :  { %v285_v49 = vsub.f32 %v1228_v51, %v269_v42  ;;  %299 = vst [vmem:[#allocation19 + $0x10] sm:$0xff] %v295_v43  ;;  %v284_v63 = vadd.f32 %v280_v35, %v276_v44  ;;  %v218_v11 = vmul.f32 %v1056_v9, %v1039_v53  ;;  %v263_v12 = vmul.f32 %v1006_v34, %v246_v56 }
  0x44   :  { %v286_v36 = vsub.f32 %v220_v24, %v270_v55  ;;  %v271_v57 = vsub.f32 %v262_v48, %v267_v20  ;;  %v268_v61 = vmul.f32 %v1021_v41, %v258_v31  ;;  %v309_v8 = vsub.f32 %v989_v25, %v993_v26 }
  0x45   :  { %289 = vst [vmem:[#allocation18] sm:$0xff] %v285_v49  ;;  %v296_v6 = vsub.f32 %v234_v50, %v284_v63  ;;  %v222_v62 = vsub.f32 %v214_v54, %v218_v11  ;;  %v325_v56 = vmul.f32 %v941_v4, %v935_v2  ;;  %v329_v24 = vmul.f32 %v943_v5, %v939_v3 }
  0x46   :  { %290 = vst [vmem:[#allocation18 + $0x8] sm:$0xff] %v286_v36  ;;  %v287_v25 = vsub.f32 %v221_v16, %v271_v57  ;;  %v272_v26 = vsub.f32 %v263_v12, %v268_v61  ;;  %v337_v15 = vmul.f32 %v941_v4, %v939_v3  ;;  %v341_v30 = vmul.f32 %v943_v5, %v935_v2 }
  0x47   :  { %300 = vst [vmem:[#allocation19 + $0x18] sm:$0xff] %v296_v6  ;;  %v333_v50 = vadd.f32 %v329_v24, %v325_v56  ;;  %v302_v31 = vmul.f32 %v983_v23, %v955_v10  ;;  %v306_v35 = vmul.f32 %v995_v29, %v973_v17  ;;  %v326_v37 = vmul.f32 %v979_v21, %v975_v18 }
  0x48   :  { %291 = vst [vmem:[#allocation18 + $0x10] sm:$0xff] %v287_v25  ;;  %v288_v42 = vsub.f32 %v222_v62, %v272_v26  ;;  %v345_v27 = vsub.f32 %v337_v15, %v341_v30  ;;  %v330_v3 = vmul.f32 %v981_v22, %v977_v19  ;;  %v338_v2 = vmul.f32 %v979_v21, %v977_v19  ;;  %414 = dma.vmem_to_hbm [thread:$0]  %s407_s24, 512, %s409_s26, [#allocation20], %s801_s29, %s801_s29, %s802_s30   ;;  %v1229_v25 = vld [vmem:[#allocation33_spill] sm:$0xff] }
  0x49   :  { %v349_v4 = vmul.f32 %v333_v50, %v1006_v34  ;;  %v310_v5 = vsub.f32 %v302_v31, %v306_v35  ;;  %v342_v28 = vmul.f32 %v981_v22, %v975_v18  ;;  %v303_v43 = vmul.f32 %v1028_v46, %v1001_v32 }
  0x4a   :  { %292 = vst [vmem:[#allocation18 + $0x18] sm:$0xff] %v288_v42  ;;  %v353_v44 = vmul.f32 %v345_v27, %v1021_v41  ;;  %v334_v48 = vadd.f32 %v330_v3, %v326_v37  ;;  %v307_v19 = vmul.f32 %v1030_v47, %v1003_v33  ;;  %v327_v21 = vmul.f32 %v1018_v40, %v1014_v38 }
  0x4b   :  { %v346_v51 = vsub.f32 %v338_v2, %v342_v28  ;;  %v331_v49 = vmul.f32 %v1026_v45, %v1016_v39  ;;  %v339_v18 = vmul.f32 %v1018_v40, %v1016_v39  ;;  %v343_v22 = vmul.f32 %v1026_v45, %v1014_v38  ;;  %401 = dma.vmem_to_hbm [thread:$0]  %s394_s28, 512, %s396_s2, [#allocation4], %s801_s29, %s801_s29, %s802_s30  }
  0x4c   :  { %v357_v55 = vsub.f32 %v349_v4, %v353_v44  ;;  %v350_v20 = vmul.f32 %v334_v48, %v1006_v34  ;;  %v311_v54 = vsub.f32 %v303_v43, %v307_v19  ;;  %v304_v63 = vmul.f32 %v1058_v13, %v1037_v52 }
  0x4d   :  { %v354_v16 = vmul.f32 %v346_v51, %v1021_v41  ;;  %v335_v11 = vadd.f32 %v331_v49, %v327_v21  ;;  %v347_v12 = vsub.f32 %v339_v18, %v343_v22  ;;  %v308_v39 = vmul.f32 %v1060_v14, %v1039_v53 }
  0x4e   :  { %v373_v40 = vadd.f32 %v357_v55, %v309_v8  ;;  %v328_v38 = vmul.f32 %v1051_v60, %v1047_v58  ;;  %v332_v45 = vmul.f32 %v1056_v9, %v1049_v59  ;;  %v340_v36 = vmul.f32 %v1051_v60, %v1049_v59 }
  0x4f   :  { %v358_v57 = vsub.f32 %v350_v20, %v354_v16  ;;  %v351_v61 = vmul.f32 %v335_v11, %v1006_v34  ;;  %v355_v6 = vmul.f32 %v347_v12, %v1021_v41  ;;  %v312_v62 = vsub.f32 %v304_v63, %v308_v39 }
  0x50   :  { %377 = vst [vmem:[#allocation21] sm:$0xff] %v373_v40  ;;  %v336_v56 = vadd.f32 %v332_v45, %v328_v38  ;;  %v344_v8 = vmul.f32 %v1056_v9, %v1047_v58  ;;  %v313_v24 = vmul.f32 %v949_v7, %v931_v0  ;;  %v317_v26 = vmul.f32 %v1229_v25, %v933_v1 }
  0x51   :  { %v374_v15 = vadd.f32 %v358_v57, %v310_v5  ;;  %v359_v30 = vsub.f32 %v351_v61, %v355_v6  ;;  %v361_v59 = vmul.f32 %v345_v27, %v1006_v34  ;;  %v365_v60 = vmul.f32 %v333_v50, %v1021_v41 }
  0x52   :  { %v348_v31 = vsub.f32 %v340_v36, %v344_v8  ;;  %v352_v35 = vmul.f32 %v336_v56, %v1006_v34  ;;  %v321_v37 = vadd.f32 %v317_v26, %v313_v24  ;;  %v314_v42 = vmul.f32 %v995_v29, %v955_v10 }
  0x53   :  { %378 = vst [vmem:[#allocation21 + $0x8] sm:$0xff] %v374_v15  ;;  %v375_v58 = vadd.f32 %v359_v30, %v311_v54  ;;  %v369_v9 = vadd.f32 %v365_v60, %v361_v59  ;;  %v318_v0 = vmul.f32 %v983_v23, %v973_v17  ;;  %v362_v1 = vmul.f32 %v346_v51, %v1006_v34 }
  0x54   :  { %v356_v7 = vmul.f32 %v348_v31, %v1021_v41  ;;  %v366_v27 = vmul.f32 %v334_v48, %v1021_v41  ;;  %v315_v50 = vmul.f32 %v1030_v47, %v1001_v32  ;;  %v319_v3 = vmul.f32 %v1028_v46, %v1003_v33 }
  0x55   :  { %379 = vst [vmem:[#allocation21 + $0x10] sm:$0xff] %v375_v58  ;;  %v381_v10 = vadd.f32 %v369_v9, %v321_v37  ;;  %v322_v29 = vadd.f32 %v318_v0, %v314_v42  ;;  %v363_v2 = vmul.f32 %v347_v12, %v1006_v34  ;;  %v367_v4 = vmul.f32 %v335_v11, %v1021_v41 }
  0x56   :  { %v360_v17 = vsub.f32 %v352_v35, %v356_v7  ;;  %v370_v23 = vadd.f32 %v366_v27, %v362_v1  ;;  %v323_v32 = vadd.f32 %v319_v3, %v315_v50  ;;  %v316_v33 = vmul.f32 %v1060_v14, %v1037_v52 }
  0x57   :  { %385 = vst [vmem:[#allocation22] sm:$0xff] %v381_v10  ;;  %v371_v46 = vadd.f32 %v367_v4, %v363_v2  ;;  %v320_v47 = vmul.f32 %v1058_v13, %v1039_v53  ;;  %v364_v5 = vmul.f32 %v348_v31, %v1006_v34  ;;  %v368_v28 = vmul.f32 %v336_v56, %v1021_v41 }
  0x58   :  { %v376_v43 = vadd.f32 %v360_v17, %v312_v62  ;;  %v382_v44 = vadd.f32 %v370_v23, %v322_v29 }
  0x59   :  { %v383_v52 = vadd.f32 %v371_v46, %v323_v32  ;;  %v324_v14 = vadd.f32 %v320_v47, %v316_v33  ;;  %v372_v48 = vadd.f32 %v368_v28, %v364_v5 }
  0x5a   :  { %380 = vst [vmem:[#allocation21 + $0x18] sm:$0xff] %v376_v43 }
  0x5b   :  { %386 = vst [vmem:[#allocation22 + $0x8] sm:$0xff] %v382_v44  ;;  %v384_v34 = vadd.f32 %v372_v48, %v324_v14  ;;  %427 = dma.vmem_to_hbm [thread:$0]  %s420_s14, 512, %s422_s4, [#allocation20], %s801_s29, %s801_s29, %s802_s30  }
  0x5c   :  { %387 = vst [vmem:[#allocation22 + $0x10] sm:$0xff] %v383_v52 }
  0x5d   :  { %388 = vst [vmem:[#allocation22 + $0x18] sm:$0xff] %v384_v34 }
  0x5e   :  { %440 = dma.vmem_to_hbm [thread:$0]  %s433_s3, 512, %s435_s11, [#allocation23], %s801_s29, %s801_s29, %s802_s30  }
  0x5f   :  { %794 = dma.done.wait [#allocation4], 512  }
  0x60   :  { %795 = vsyncadd [#allocation4], 4294966784 }
  0x61   :  { %796 = dma.done.wait [#allocation20], 1024  }
  0x62   :  { %797 = vsyncadd [#allocation20], 4294966272 }
  0x63   :  { %798 = dma.done.wait [#allocation23], 512  }
  0x64   :  { %799 = vsyncadd [#allocation23], 4294966784 }
  0x65   :  { %457 = vsyncpa [#allocation3], 1 }
  0x66   :  { %458 = vsyncpa [#allocation7], 1 }
  0x67   :  { %459 = vsyncpa [#allocation10], 1 }
  0x68   :  { %460 = vsyncpa [#allocation13], 1 }
  0x69   :  { %461 = vsyncpa [#allocation16], 1 }
  0x6a   :  { %462 = vsyncpa [#allocation4], 1 }
  0x6b   :  { %463 = vsyncpa [#allocation20], 1 }
  0x6c   :  { %464 = vsyncpa [#allocation23], 1 }
  0x6d   :  { %465 = vsyncpa [#allocation5], 1 }

</bundles_post_ra>
